<compile_context>
chip_gen: v6e
topology: v6e:2x2x1
jax: 0.10.0
libtpu: 0.0.40
codegen_flags: <defaults>
</compile_context>

<pallas_src>
import math

import jax
import jax.numpy as jnp
from jax.experimental import pallas as pl
from jax.experimental.pallas import tpu as pltpu


MLP_HIDDEN = 100        # logical MLP hidden size (matches nn.Linear defaults)
MLP_HIDDEN_PAD = 128    # lane-aligned padded hidden size


def _round_up(x, m):
    return (x + m - 1) // m * m


# ---------------------------------------------------------------------------
# Kernel
# ---------------------------------------------------------------------------
def edge_model_kernel(batch_ref, src_ref, dest_ref, edge_ref,
                      w0_ref, b0_ref, w1_ref, b1_ref, w2_ref, b2_ref,
                      w3_ref, b3_ref, gamma_ref, beta_ref, out_ref):
    cdt = w0_ref.dtype                        # MXU operand dtype (bf16 or f32)
    tile = batch_ref.shape[0]
    hidden = edge_ref.shape[1]

    edge_f32 = edge_ref[...].astype(jnp.float32)     # residual stays f32

    # one-hot(batch), padded to `hidden` lanes (requires n_graphs <= hidden).
    # Out-of-range / negative batch indices give an all-zero row: the u
    # contribution is silently dropped (documented assumption).
    lane = jax.lax.broadcasted_iota(jnp.int32, (tile, hidden), 1)
    one_hot = (lane == batch_ref[...]).astype(cdt)

    # --- layer 0: single K=4H matmul -------------------------------------
    # operand = [src | dest | edge | one_hot]          -> [tile, 4H]
    # weight  = [W0_src; W0_dest; W0_edge; u @ W0_u]   -> [4H, 128]
    x = jnp.concatenate(
        [src_ref[...].astype(cdt), dest_ref[...].astype(cdt),
         edge_f32.astype(cdt), one_hot], axis=1)
    h = jnp.dot(x, w0_ref[...], preferred_element_type=jnp.float32)
    h = jnp.maximum(h + b0_ref[...], 0.0)

    # --- hidden layers + ReLU, final projection ---------------------------
    h = jnp.dot(h.astype(cdt), w1_ref[...], preferred_element_type=jnp.float32)
    h = jnp.maximum(h + b1_ref[...], 0.0)
    h = jnp.dot(h.astype(cdt), w2_ref[...], preferred_element_type=jnp.float32)
    h = jnp.maximum(h + b2_ref[...], 0.0)
    y = jnp.dot(h.astype(cdt), w3_ref[...], preferred_element_type=jnp.float32)
    y = y + b3_ref[...]

    # --- LayerNorm (eps=1e-5, elementwise affine), all f32 ----------------
    mean = jnp.mean(y, axis=1, keepdims=True)
    var = jnp.mean(jnp.square(y - mean), axis=1, keepdims=True)
    y = (y - mean) * jax.lax.rsqrt(var + 1e-5)
    y = y * gamma_ref[...] + beta_ref[...]

    # --- residual: edge_attr + mlp(cur_state) -----------------------------
    out_ref[...] = (edge_f32 + y).astype(out_ref.dtype)


# ---------------------------------------------------------------------------
# Parameters
# ---------------------------------------------------------------------------
def init_linear(key, n_in, n_out, dtype=jnp.float32):
    """Deterministic init matching nn.Linear's default uniform bounds."""
    kw, kb = jax.random.split(key)
    bound = 1.0 / math.sqrt(n_in)
    w = jax.random.uniform(kw, (n_in, n_out), dtype, -bound, bound)
    b = jax.random.uniform(kb, (1, n_out), dtype, -bound, bound)
    return w, b


def make_edge_model_params(key, hidden, mlp_hidden=MLP_HIDDEN):
    k0, k1, k2, k3 = jax.random.split(key, 4)
    w0, b0 = init_linear(k0, 4 * hidden, mlp_hidden)
    w1, b1 = init_linear(k1, mlp_hidden, mlp_hidden)
    w2, b2 = init_linear(k2, mlp_hidden, mlp_hidden)
    w3, b3 = init_linear(k3, mlp_hidden, hidden)
    gamma = jnp.ones((1, hidden), jnp.float32)   # LayerNorm weight
    beta = jnp.zeros((1, hidden), jnp.float32)   # LayerNorm bias
    return (w0, b0, w1, b1, w2, b2, w3, b3, gamma, beta)


def prepare_kernel_params(params, hidden, *, use_bf16=True,
                          padded_hidden=MLP_HIDDEN_PAD):
    """Zero-pad mlp_hidden -> 128 (lane aligned), split W0 into the
    src/dest/edge block (static) and the u block (folded per call), and cast
    MXU weights to bf16.  Zero padding keeps the math exact in f32: padded
    hidden units are ReLU(x@0 + 0) = 0 and feed zero rows of the next matrix.
    """
    (w0, b0, w1, b1, w2, b2, w3, b3, gamma, beta) = params
    mh = w1.shape[0]
    pad = padded_hidden - mh
    assert pad >= 0
    wdt = jnp.bfloat16 if use_bf16 else jnp.float32

    w0p = jnp.pad(w0, ((0, 0), (0, pad)))                  # [4H, 128]
    w0abc = w0p[:3 * hidden]                               # [3H, 128] src|dest|edge rows
    w0d = w0p[3 * hidden:]                                 # [H, 128]  u rows
    w1p = jnp.pad(w1, ((0, pad), (0, pad)))                # [128, 128]
    w2p = jnp.pad(w2, ((0, pad), (0, pad)))
    w3p = jnp.pad(w3, ((0, pad), (0, 0)))                  # [128, H]
    b0p = jnp.pad(b0, ((0, 0), (0, pad)))                  # [1, 128]
    b1p = jnp.pad(b1, ((0, 0), (0, pad)))
    b2p = jnp.pad(b2, ((0, 0), (0, pad)))

    return (w0abc.astype(wdt), w0d.astype(wdt),
            b0p, w1p.astype(wdt), b1p, w2p.astype(wdt), b2p,
            w3p.astype(wdt), b3, gamma, beta)


# ---------------------------------------------------------------------------
# Wrapper
# ---------------------------------------------------------------------------
def edge_model_forward(src, dest, edge_attr, u, batch, kparams,
                       *, max_tile_rows=1024):
    (w0abc, w0d, b0, w1, b1, w2, b2, w3, b3, gamma, beta) = kparams
    E, H = edge_attr.shape
    B = u.shape[0]
    wdt = w0abc.dtype
    HM = w1.shape[0]                  # padded mlp hidden (128)

    assert B <= H, "one-hot gather path requires n_graphs <= hidden"
    # TODO(synk): for n_graphs > hidden, gather u[batch] (or uw0d[batch]) on the
    # wrapper side (or scalar-prefetch batch into SMEM) instead of the one-hot path.

    # Fold the u-projection: uw0d = u @ W0_u  -> [B, 128], zero-pad to [H, 128]
    # and stack under the static src/dest/edge weight block.
    uw0d = jnp.dot(u.astype(jnp.float32), w0d.astype(jnp.float32),
                   precision=jax.lax.Precision.HIGHEST).astype(wdt)
    uw0d = jnp.pad(uw0d, ((0, H - B), (0, 0)))
    w0_comb = jnp.concatenate([w0abc, uw0d], axis=0)       # [4H, 128]

    # Row tiling: tile multiple of 8, and aim for >= 2 grid steps when E allows
    # it so dimension_semantics=("parallel",) can use both v7x TensorCores.
    tile = min(_round_up(max_tile_rows, 8), _round_up(pl.cdiv(E, 2), 8))
    e_pad = _round_up(E, tile)
    if e_pad != E:
        pe = e_pad - E
        src = jnp.pad(src, ((0, pe), (0, 0)))
        dest = jnp.pad(dest, ((0, pe), (0, 0)))
        edge_p = jnp.pad(edge_attr, ((0, pe), (0, 0)))
        batch = jnp.pad(batch, (0, pe))
    else:
        edge_p = edge_attr
    batch2d = batch.astype(jnp.int32).reshape(e_pad, 1)

    kweights = (w0_comb, b0, w1, b1, w2, b2, w3, b3, gamma, beta)

    grid = (e_pad // tile,)
    row = lambda i: (i, 0)
    const = lambda i: (0, 0)

    in_specs = [
        pl.BlockSpec((tile, 1), row),            # batch (per-edge graph id)
        pl.BlockSpec((tile, H), row),            # src   (f32 or bf16)
        pl.BlockSpec((tile, H), row),            # dest  (f32 or bf16)
        pl.BlockSpec((tile, H), row),            # edge_attr (f32, residual)
    ] + [pl.BlockSpec(w.shape, const) for w in kweights]   # weights resident
    out_specs = pl.BlockSpec((tile, H), row)

    # Honest VMEM budget: double-buffered per-step tiles + resident weights.
    per_step_bytes = (tile * 4
                      + tile * H * (src.dtype.itemsize + dest.dtype.itemsize)
                      + tile * H * 4            # edge_attr
                      + tile * H * 4)           # output
    weight_bytes = sum(int(w.size) * w.dtype.itemsize for w in kweights)
    vmem_limit = max(4 << 20, 2 * (per_step_bytes + weight_bytes) + (2 << 20))

    flops = e_pad * (2 * 4 * H * HM + 2 * 2 * HM * HM + 2 * HM * H)
    bytes_accessed = (batch2d.size * 4
                      + src.size * src.dtype.itemsize
                      + dest.size * dest.dtype.itemsize
                      + edge_p.size * 4
                      + weight_bytes
                      + e_pad * H * 4)

    out = pl.pallas_call(
        edge_model_kernel,
        out_shape=jax.ShapeDtypeStruct((e_pad, H), edge_attr.dtype),
        grid_spec=pltpu.PrefetchScalarGridSpec(
            num_scalar_prefetch=0,
            grid=grid,
            in_specs=in_specs,
            out_specs=out_specs,
        ),
        compiler_params=pltpu.CompilerParams(
            dimension_semantics=("parallel",),
            vmem_limit_bytes=int(vmem_limit),
        ),
        cost_estimate=pl.CostEstimate(
            flops=flops, transcendentals=e_pad, bytes_accessed=bytes_accessed),
    )(batch2d, src, dest, edge_p, *kweights)

    return out[:E] if e_pad != E else out


# ---------------------------------------------------------------------------
# Pure-JAX reference (matches the PyTorch module)
# ---------------------------------------------------------------------------
def edge_model_reference(src, dest, edge_attr, u, batch, params):
    (w0, b0, w1, b1, w2, b2, w3, b3, gamma, beta) = params
    x = jnp.concatenate([src, dest, edge_attr, u[batch]], axis=1)
    h = jax.nn.relu(x @ w0 + b0)
    h = jax.nn.relu(h @ w1 + b1)
    h = jax.nn.relu(h @ w2 + b2)
    y = h @ w3 + b3
    mean = jnp.mean(y, axis=1, keepdims=True)
    var = jnp.mean((y - mean) ** 2, axis=1, keepdims=True)
    y = (y - mean) / jnp.sqrt(var + 1e-5) * gamma + beta
    return edge_attr + y


if __name__ == "__main__":
    E = 8        # number of edges
    H = 32       # hidden size of the graph network
    B = 2        # number of graphs in the batch

    key = jax.random.PRNGKey(0)
    k_src, k_dst, k_edge, k_u, k_batch, k_params = jax.random.split(key, 6)

    src = jax.random.normal(k_src, (E, H), jnp.float32)
    dest = jax.random.normal(k_dst, (E, H), jnp.float32)
    edge_attr = jax.random.normal(k_edge, (E, H), jnp.float32)
    u = jax.random.normal(k_u, (B, H), jnp.float32)
    batch = jax.random.randint(k_batch, (E,), 0, B, jnp.int32)

    params = make_edge_model_params(k_params, H)
    ref = edge_model_reference(src, dest, edge_attr, u, batch, params)

    # f32 path: padding / packed-W0 / folded u-projection must stay very close
    # to the reference (not bit-exact: summation order differs).
    kparams_f32 = prepare_kernel_params(params, H, use_bf16=False)
    out_f32 = jax.block_until_ready(
        edge_model_forward(src, dest, edge_attr, u, batch, kparams_f32))
    assert out_f32.shape == (E, H)
    assert jnp.allclose(out_f32, ref, atol=1e-4, rtol=1e-4)

    # bf16-MXU fast path: src/dest fed as bf16 at the boundary (as an upstream
    # producer would), edge_attr stays f32 for the residual.
    kparams_bf16 = prepare_kernel_params(params, H, use_bf16=True)
    out_bf16 = jax.block_until_ready(
        edge_model_forward(src.astype(jnp.bfloat16), dest.astype(jnp.bfloat16),
                           edge_attr, u, batch, kparams_bf16))
    assert out_bf16.shape == (E, H)
    assert jnp.allclose(out_bf16, ref, atol=5e-2, rtol=5e-2)

    print("KERNEL_OK")
</pallas_src>

<mosaic_0001>
module attributes {stable_mosaic.version = 11 : i64} {
  func.func @edge_model_kernel(%arg0: i32, %arg1: memref<8x1xi32, #tpu.memory_space<vmem>>, %arg2: memref<8x32xf32, #tpu.memory_space<vmem>>, %arg3: memref<8x32xf32, #tpu.memory_space<vmem>>, %arg4: memref<8x32xf32, #tpu.memory_space<vmem>>, %arg5: memref<128x128xf32, #tpu.memory_space<vmem>>, %arg6: memref<1x128xf32, #tpu.memory_space<vmem>>, %arg7: memref<128x128xf32, #tpu.memory_space<vmem>>, %arg8: memref<1x128xf32, #tpu.memory_space<vmem>>, %arg9: memref<128x128xf32, #tpu.memory_space<vmem>>, %arg10: memref<1x128xf32, #tpu.memory_space<vmem>>, %arg11: memref<128x32xf32, #tpu.memory_space<vmem>>, %arg12: memref<1x32xf32, #tpu.memory_space<vmem>>, %arg13: memref<1x32xf32, #tpu.memory_space<vmem>>, %arg14: memref<1x32xf32, #tpu.memory_space<vmem>>, %arg15: memref<8x32xf32, #tpu.memory_space<vmem>>) attributes {dimension_semantics = [#tpu.dimension_semantics<parallel>], iteration_bounds = array<i64: 1>, scalar_prefetch = 0 : i64, scratch_operands = 0 : i64, tpu.core_type = #tpu.core_type<tc>, window_params = [{transform_indices = @transform_0, window_bounds = array<i64: 8, 1>}, {transform_indices = @transform_1, window_bounds = array<i64: 8, 32>}, {transform_indices = @transform_2, window_bounds = array<i64: 8, 32>}, {transform_indices = @transform_3, window_bounds = array<i64: 8, 32>}, {pipeline_mode = #tpu.pipeline_mode<synchronous>, transform_indices = @transform_4, window_bounds = array<i64: 128, 128>}, {pipeline_mode = #tpu.pipeline_mode<synchronous>, transform_indices = @transform_5, window_bounds = array<i64: 1, 128>}, {pipeline_mode = #tpu.pipeline_mode<synchronous>, transform_indices = @transform_6, window_bounds = array<i64: 128, 128>}, {pipeline_mode = #tpu.pipeline_mode<synchronous>, transform_indices = @transform_7, window_bounds = array<i64: 1, 128>}, {pipeline_mode = #tpu.pipeline_mode<synchronous>, transform_indices = @transform_8, window_bounds = array<i64: 128, 128>}, {pipeline_mode = #tpu.pipeline_mode<synchronous>, transform_indices = @transform_9, window_bounds = array<i64: 1, 128>}, {pipeline_mode = #tpu.pipeline_mode<synchronous>, transform_indices = @transform_10, window_bounds = array<i64: 128, 32>}, {pipeline_mode = #tpu.pipeline_mode<synchronous>, transform_indices = @transform_11, window_bounds = array<i64: 1, 32>}, {pipeline_mode = #tpu.pipeline_mode<synchronous>, transform_indices = @transform_12, window_bounds = array<i64: 1, 32>}, {pipeline_mode = #tpu.pipeline_mode<synchronous>, transform_indices = @transform_13, window_bounds = array<i64: 1, 32>}, {transform_indices = @transform_14, window_bounds = array<i64: 8, 32>}]} {
    %c0 = arith.constant 0 : index
    %c0_0 = arith.constant 0 : index
    %0 = vector.load %arg4[%c0, %c0_0] : memref<8x32xf32, #tpu.memory_space<vmem>>, vector<8x32xf32>
    %1 = tpu.iota {dimensions = array<i32: 1>} : vector<8x32xi32>
    %c0_1 = arith.constant 0 : index
    %c0_2 = arith.constant 0 : index
    %2 = vector.load %arg1[%c0_1, %c0_2] : memref<8x1xi32, #tpu.memory_space<vmem>>, vector<8x1xi32>
    %3 = vector.broadcast %2 : vector<8x1xi32> to vector<8x32xi32>
    %4 = arith.cmpi eq, %1, %3 : vector<8x32xi32>
    %5 = arith.extui %4 : vector<8x32xi1> to vector<8x32xi32>
    %6 = arith.sitofp %5 : vector<8x32xi32> to vector<8x32xf32>
    %c0_3 = arith.constant 0 : index
    %c0_4 = arith.constant 0 : index
    %7 = vector.load %arg2[%c0_3, %c0_4] : memref<8x32xf32, #tpu.memory_space<vmem>>, vector<8x32xf32>
    %c0_5 = arith.constant 0 : index
    %c0_6 = arith.constant 0 : index
    %8 = vector.load %arg3[%c0_5, %c0_6] : memref<8x32xf32, #tpu.memory_space<vmem>>, vector<8x32xf32>
    %9 = tpu.concatenate %7, %8, %0, %6 in 1 : vector<8x32xf32>, vector<8x32xf32>, vector<8x32xf32>, vector<8x32xf32> -> vector<8x128xf32>
    %c0_7 = arith.constant 0 : index
    %c0_8 = arith.constant 0 : index
    %10 = vector.load %arg5[%c0_7, %c0_8] : memref<128x128xf32, #tpu.memory_space<vmem>>, vector<128x128xf32>
    %cst = arith.constant dense<0.000000e+00> : vector<8x128xf32>
    %11 = tpu.matmul %9, %10, %cst {dimension_numbers = #tpu.dot_dimension_numbers<[1], [0], [0], [1], [0, 0, 1, 1], [], []>} : vector<8x128xf32>, vector<128x128xf32>, vector<8x128xf32> -> vector<8x128xf32>
    %c0_9 = arith.constant 0 : index
    %c0_10 = arith.constant 0 : index
    %12 = vector.load %arg6[%c0_9, %c0_10] : memref<1x128xf32, #tpu.memory_space<vmem>>, vector<1x128xf32>
    %13 = vector.broadcast %12 : vector<1x128xf32> to vector<8x128xf32>
    %14 = arith.addf %11, %13 : vector<8x128xf32>
    %cst_11 = arith.constant 0.000000e+00 : f32
    %15 = vector.broadcast %cst_11 : f32 to vector<8x128xf32>
    %16 = arith.maximumf %14, %15 : vector<8x128xf32>
    %c0_12 = arith.constant 0 : index
    %c0_13 = arith.constant 0 : index
    %17 = vector.load %arg7[%c0_12, %c0_13] : memref<128x128xf32, #tpu.memory_space<vmem>>, vector<128x128xf32>
    %cst_14 = arith.constant dense<0.000000e+00> : vector<8x128xf32>
    %18 = tpu.matmul %16, %17, %cst_14 {dimension_numbers = #tpu.dot_dimension_numbers<[1], [0], [0], [1], [0, 0, 1, 1], [], []>} : vector<8x128xf32>, vector<128x128xf32>, vector<8x128xf32> -> vector<8x128xf32>
    %c0_15 = arith.constant 0 : index
    %c0_16 = arith.constant 0 : index
    %19 = vector.load %arg8[%c0_15, %c0_16] : memref<1x128xf32, #tpu.memory_space<vmem>>, vector<1x128xf32>
    %20 = vector.broadcast %19 : vector<1x128xf32> to vector<8x128xf32>
    %21 = arith.addf %18, %20 : vector<8x128xf32>
    %cst_17 = arith.constant 0.000000e+00 : f32
    %22 = vector.broadcast %cst_17 : f32 to vector<8x128xf32>
    %23 = arith.maximumf %21, %22 : vector<8x128xf32>
    %c0_18 = arith.constant 0 : index
    %c0_19 = arith.constant 0 : index
    %24 = vector.load %arg9[%c0_18, %c0_19] : memref<128x128xf32, #tpu.memory_space<vmem>>, vector<128x128xf32>
    %cst_20 = arith.constant dense<0.000000e+00> : vector<8x128xf32>
    %25 = tpu.matmul %23, %24, %cst_20 {dimension_numbers = #tpu.dot_dimension_numbers<[1], [0], [0], [1], [0, 0, 1, 1], [], []>} : vector<8x128xf32>, vector<128x128xf32>, vector<8x128xf32> -> vector<8x128xf32>
    %c0_21 = arith.constant 0 : index
    %c0_22 = arith.constant 0 : index
    %26 = vector.load %arg10[%c0_21, %c0_22] : memref<1x128xf32, #tpu.memory_space<vmem>>, vector<1x128xf32>
    %27 = vector.broadcast %26 : vector<1x128xf32> to vector<8x128xf32>
    %28 = arith.addf %25, %27 : vector<8x128xf32>
    %cst_23 = arith.constant 0.000000e+00 : f32
    %29 = vector.broadcast %cst_23 : f32 to vector<8x128xf32>
    %30 = arith.maximumf %28, %29 : vector<8x128xf32>
    %c0_24 = arith.constant 0 : index
    %c0_25 = arith.constant 0 : index
    %31 = vector.load %arg11[%c0_24, %c0_25] : memref<128x32xf32, #tpu.memory_space<vmem>>, vector<128x32xf32>
    %cst_26 = arith.constant dense<0.000000e+00> : vector<8x32xf32>
    %32 = tpu.matmul %30, %31, %cst_26 {dimension_numbers = #tpu.dot_dimension_numbers<[1], [0], [0], [1], [0, 0, 1, 1], [], []>} : vector<8x128xf32>, vector<128x32xf32>, vector<8x32xf32> -> vector<8x32xf32>
    %c0_27 = arith.constant 0 : index
    %c0_28 = arith.constant 0 : index
    %33 = vector.load %arg12[%c0_27, %c0_28] : memref<1x32xf32, #tpu.memory_space<vmem>>, vector<1x32xf32>
    %34 = vector.broadcast %33 : vector<1x32xf32> to vector<8x32xf32>
    %35 = arith.addf %32, %34 : vector<8x32xf32>
    %cst_29 = arith.constant dense<0.000000e+00> : vector<8xf32>
    %36 = vector.multi_reduction <add>, %35, %cst_29 [1] : vector<8x32xf32> to vector<8xf32>
    %37 = vector.shape_cast %36 : vector<8xf32> to vector<8x1xf32>
    %cst_30 = arith.constant 3.200000e+01 : f32
    %38 = vector.broadcast %cst_30 : f32 to vector<8x1xf32>
    %39 = arith.divf %37, %38 : vector<8x1xf32>
    %40 = vector.broadcast %39 : vector<8x1xf32> to vector<8x32xf32>
    %41 = arith.subf %35, %40 : vector<8x32xf32>
    %42 = arith.mulf %41, %41 : vector<8x32xf32>
    %cst_31 = arith.constant dense<0.000000e+00> : vector<8xf32>
    %43 = vector.multi_reduction <add>, %42, %cst_31 [1] : vector<8x32xf32> to vector<8xf32>
    %44 = vector.shape_cast %43 : vector<8xf32> to vector<8x1xf32>
    %cst_32 = arith.constant 3.200000e+01 : f32
    %45 = vector.broadcast %cst_32 : f32 to vector<8x1xf32>
    %46 = arith.divf %44, %45 : vector<8x1xf32>
    %47 = vector.broadcast %39 : vector<8x1xf32> to vector<8x32xf32>
    %48 = arith.subf %35, %47 : vector<8x32xf32>
    %cst_33 = arith.constant 9.99999974E-6 : f32
    %49 = vector.broadcast %cst_33 : f32 to vector<8x1xf32>
    %50 = arith.addf %46, %49 : vector<8x1xf32>
    %51 = math.rsqrt %50 : vector<8x1xf32>
    %52 = vector.broadcast %51 : vector<8x1xf32> to vector<8x32xf32>
    %53 = arith.mulf %48, %52 : vector<8x32xf32>
    %c0_34 = arith.constant 0 : index
    %c0_35 = arith.constant 0 : index
    %54 = vector.load %arg13[%c0_34, %c0_35] : memref<1x32xf32, #tpu.memory_space<vmem>>, vector<1x32xf32>
    %55 = vector.broadcast %54 : vector<1x32xf32> to vector<8x32xf32>
    %56 = arith.mulf %53, %55 : vector<8x32xf32>
    %c0_36 = arith.constant 0 : index
    %c0_37 = arith.constant 0 : index
    %57 = vector.load %arg14[%c0_36, %c0_37] : memref<1x32xf32, #tpu.memory_space<vmem>>, vector<1x32xf32>
    %58 = vector.broadcast %57 : vector<1x32xf32> to vector<8x32xf32>
    %59 = arith.addf %56, %58 : vector<8x32xf32>
    %60 = arith.addf %0, %59 : vector<8x32xf32>
    %c0_38 = arith.constant 0 : index
    %c0_39 = arith.constant 0 : index
    %61 = vector.load %arg15[%c0_38, %c0_39] : memref<8x32xf32, #tpu.memory_space<vmem>>, vector<8x32xf32>
    tpu.vector_store %arg15[%c0_38, %c0_39], %60 {strides = array<i32>} : memref<8x32xf32, #tpu.memory_space<vmem>>, vector<8x32xf32>,
    return
  }
  func.func @transform_0(%arg0: i32) -> (i32, i32) {
    %c0_i32 = arith.constant 0 : i32
    %c0_i32_0 = arith.constant 0 : i32
    return %arg0, %c0_i32 : i32, i32
  }
  func.func @transform_1(%arg0: i32) -> (i32, i32) {
    %c0_i32 = arith.constant 0 : i32
    %c0_i32_0 = arith.constant 0 : i32
    return %arg0, %c0_i32 : i32, i32
  }
  func.func @transform_2(%arg0: i32) -> (i32, i32) {
    %c0_i32 = arith.constant 0 : i32
    %c0_i32_0 = arith.constant 0 : i32
    return %arg0, %c0_i32 : i32, i32
  }
  func.func @transform_3(%arg0: i32) -> (i32, i32) {
    %c0_i32 = arith.constant 0 : i32
    %c0_i32_0 = arith.constant 0 : i32
    return %arg0, %c0_i32 : i32, i32
  }
  func.func @transform_4(%arg0: i32) -> (i32, i32) {
    %c0_i32 = arith.constant 0 : i32
    %c0_i32_0 = arith.constant 0 : i32
    %c0_i32_1 = arith.constant 0 : i32
    return %c0_i32, %c0_i32_0 : i32, i32
  }
  func.func @transform_5(%arg0: i32) -> (i32, i32) {
    %c0_i32 = arith.constant 0 : i32
    %c0_i32_0 = arith.constant 0 : i32
    %c0_i32_1 = arith.constant 0 : i32
    return %c0_i32, %c0_i32_0 : i32, i32
  }
  func.func @transform_6(%arg0: i32) -> (i32, i32) {
    %c0_i32 = arith.constant 0 : i32
    %c0_i32_0 = arith.constant 0 : i32
    %c0_i32_1 = arith.constant 0 : i32
    return %c0_i32, %c0_i32_0 : i32, i32
  }
  func.func @transform_7(%arg0: i32) -> (i32, i32) {
    %c0_i32 = arith.constant 0 : i32
    %c0_i32_0 = arith.constant 0 : i32
    %c0_i32_1 = arith.constant 0 : i32
    return %c0_i32, %c0_i32_0 : i32, i32
  }
  func.func @transform_8(%arg0: i32) -> (i32, i32) {
    %c0_i32 = arith.constant 0 : i32
    %c0_i32_0 = arith.constant 0 : i32
    %c0_i32_1 = arith.constant 0 : i32
    return %c0_i32, %c0_i32_0 : i32, i32
  }
  func.func @transform_9(%arg0: i32) -> (i32, i32) {
    %c0_i32 = arith.constant 0 : i32
    %c0_i32_0 = arith.constant 0 : i32
    %c0_i32_1 = arith.constant 0 : i32
    return %c0_i32, %c0_i32_0 : i32, i32
  }
  func.func @transform_10(%arg0: i32) -> (i32, i32) {
    %c0_i32 = arith.constant 0 : i32
    %c0_i32_0 = arith.constant 0 : i32
    %c0_i32_1 = arith.constant 0 : i32
    return %c0_i32, %c0_i32_0 : i32, i32
  }
  func.func @transform_11(%arg0: i32) -> (i32, i32) {
    %c0_i32 = arith.constant 0 : i32
    %c0_i32_0 = arith.constant 0 : i32
    %c0_i32_1 = arith.constant 0 : i32
    return %c0_i32, %c0_i32_0 : i32, i32
  }
  func.func @transform_12(%arg0: i32) -> (i32, i32) {
    %c0_i32 = arith.constant 0 : i32
    %c0_i32_0 = arith.constant 0 : i32
    %c0_i32_1 = arith.constant 0 : i32
    return %c0_i32, %c0_i32_0 : i32, i32
  }
  func.func @transform_13(%arg0: i32) -> (i32, i32) {
    %c0_i32 = arith.constant 0 : i32
    %c0_i32_0 = arith.constant 0 : i32
    %c0_i32_1 = arith.constant 0 : i32
    return %c0_i32, %c0_i32_0 : i32, i32
  }
  func.func @transform_14(%arg0: i32) -> (i32, i32) {
    %c0_i32 = arith.constant 0 : i32
    %c0_i32_0 = arith.constant 0 : i32
    return %arg0, %c0_i32 : i32, i32
  }
}

</mosaic_0001>

<bundles_post_ra>
// kernel: tpu_custom_call.1
= control target key start
LH: loop header
LB: loop body
LE: loop exit
PB: predicated region body
PF: predicated region fallthrough
CT: control target
= control target key end

     0   :  { %19 = vsyncpa [#allocation3], 0  ;;  %s1126_s0 = inlined_call_operand.vmem [shape: s32[8,1], index: 0, kind: input, shape index: {}]   ;;  %s1127_s1 = inlined_call_operand.vmem [shape: f32[8,32], index: 1, kind: input, shape index: {}]   ;;  %s1128_s2 = inlined_call_operand.vmem [shape: f32[8,32], index: 2, kind: input, shape index: {}]   ;;  %s1129_s3 = inlined_call_operand.vmem [shape: f32[8,32], index: 3, kind: input, shape index: {}]   ;;  %s1130_s4 = inlined_call_operand.vmem [shape: f32[128,128], index: 4, kind: input, shape index: {}]   ;;  %s1131_s5 = inlined_call_operand.vmem [shape: f32[1,128], index: 5, kind: input, shape index: {}]   ;;  %s1132_s6 = inlined_call_operand.hbm [shape: f32[128,128], index: 6, kind: input, shape index: {}]   ;;  %s1133_s7 = inlined_call_operand.vmem [shape: f32[1,128], index: 7, kind: input, shape index: {}]   ;;  %s1134_s8 = inlined_call_operand.hbm [shape: f32[128,128], index: 8, kind: input, shape index: {}]   ;;  %s1135_s9 = inlined_call_operand.vmem [shape: f32[1,128], index: 9, kind: input, shape index: {}]   ;;  %s1136_s10 = inlined_call_operand.vmem [shape: f32[128,32], index: 10, kind: input, shape index: {}]   ;;  %s1137_s11 = inlined_call_operand.vmem [shape: f32[1,32], index: 11, kind: input, shape index: {}]   ;;  %s1138_s12 = inlined_call_operand.vmem [shape: f32[1,32], index: 12, kind: input, shape index: {}]   ;;  %s1139_s13 = inlined_call_operand.vmem [shape: f32[1,32], index: 13, kind: input, shape index: {}]   ;;  %s1140_s14 = inlined_call_operand.hbm [shape: f32[8,32], index: 14, kind: output, shape index: {}]  }
   0x1   :  { %20 = vsyncpa [#allocation6], 0 }
   0x2   :  { %21 = vsyncpa [#allocation4], 0  ;;  %s824_s29 = smov [#allocation2]  }
   0x3   :  { %s39_s30 = sshll.u32 %s824_s29, 4  ;;  %s40_s30 = int_to_ptr.vmem [resolvable:$true] %s39_s30 }
   0x4   :  { %s766_s15 = scalar_lea.vmem %s40_s30, 2048  ;;  %p771_p1 = scmp.lt.s32.totalorder %s40_s30, %s40_s30 }
   0x5   :  { %p767_p0 = scmp.ne.s32.totalorder %s40_s30, %s766_s15  ;;  %p772_p2 = scmp.lt.s32.totalorder %s766_s15, %s766_s15 }
   0x7   :  { %p773_p3 = por %p772_p2, %p771_p1 }
   0x9   :  { %p774_p4 = pnand %p773_p3, %p767_p0 }
   0xb   :  { %777 = shalt.err (!%p774_p4)
}
   0xc   :  { %s825_s16 = smov 128   ;;  %s826_s17 = smov 8  }
   0xd   :  { %45 = dma.hbm_to_vmem [thread:$0]  %s1132_s6, 2048, %s40_s30, [#allocation3], %s825_s16, %s825_s16, %s826_s17  }
   0xe   :  { %s827_s20 = smov [#allocation5]  }
   0xf   :  { %s53_s21 = sshll.u32 %s827_s20, 4  ;;  %s54_s21 = int_to_ptr.vmem [resolvable:$true] %s53_s21 }
  0x10   :  { %s786_s22 = scalar_lea.vmem %s54_s21, 2048  ;;  %p791_p6 = scmp.lt.s32.totalorder %s54_s21, %s54_s21 }
  0x11   :  { %p787_p5 = scmp.ne.s32.totalorder %s54_s21, %s786_s22  ;;  %p792_p7 = scmp.lt.s32.totalorder %s786_s22, %s786_s22 }
  0x13   :  { %p793_p8 = por %p792_p7, %p791_p6 }
  0x15   :  { %p794_p9 = pnand %p793_p8, %p787_p5 }
  0x17   :  { %797 = shalt.err (!%p794_p9)
}
  0x18   :  { %59 = dma.hbm_to_vmem [thread:$0]  %s1134_s8, 2048, %s54_s21, [#allocation6], %s825_s16, %s825_s16, %s826_s17  }
  0x19   :  { %818 = dma.done.wait [#allocation3], 2048  }
  0x1a   :  { %819 = vsyncadd [#allocation3], 4294965248 }
  0x1b   :  { %820 = dma.done.wait [#allocation6], 2048  }
  0x1c   :  { %821 = vsyncadd [#allocation6], 4294965248  ;;  %v828_v0 = vmov 0   ;;  %v829_v1 = vmov 0.0   ;;  %v79_v2 = vld [vmem:[%s1126_s0] sm:$0xff]  ;;  %s830_s8 = smov 64   ;;  %v77_v23 = vlaneseq }
  0x1d   :  { %755 = vset.pattern.permute.xlu0 %v828_v0  ;;  %604 = vmatprep.subr.mxu0 %v829_v1  ;;  %v924_v3 = vld [vmem:[%s1129_s3] sm:$0xff]  ;;  %v121_v4 = vld [vmem:[%s1130_s4 + $0x78] sm:$0xff]  ;;  %v120_v5 = vld [vmem:[%s1130_s4 + $0x70] sm:$0xff]  ;;  %s831_s18 = smov 32   ;;  %vm832_vm0 = vmmov 0   ;;  %vm100_vm2 = vcmask 261120  }
  0x1e   :  { %639 = vmatprep.subr.mxu1 %v829_v1  ;;  %81 = vperm.xlu0 %755, %v79_v2   ;;  %v87_v6 = vld [vmem:[%s1128_s2] sm:$0xff]  ;;  %v119_v7 = vld [vmem:[%s1130_s4 + $0x68] sm:$0xff]  ;;  %v117_v9 = vld [vmem:[%s1130_s4 + $0x58] sm:$0xff]  ;;  %v78_v26 = vand.u32 127, %v77_v23  ;;  %vm102_vm3 = vcmask 523264   ;;  %vm104_vm4 = vcmask 785408  }
  0x1f   :  { %93 = vrot.lane.b32.xlu1 %v924_v3, %s830_s8  ;;  %605 = vmatpush3.msra.mxu0 %v121_v4  ;;  %v118_v8 = vld [vmem:[%s1130_s4 + $0x60] sm:$0xff]  ;;  %v116_v10 = vld [vmem:[%s1130_s4 + $0x50] sm:$0xff]  ;;  %v115_v11 = vld [vmem:[%s1130_s4 + $0x48] sm:$0xff]  ;;  %s834_s19 = smov [#allocation7]  }
  0x20   :  { %606 = vmatprep.subr.mxu0 %v829_v1  ;;  %v114_v12 = vld [vmem:[%s1130_s4 + $0x40] sm:$0xff]  ;;  %v113_v13 = vld [vmem:[%s1130_s4 + $0x38] sm:$0xff]  ;;  %v112_v14 = vld [vmem:[%s1130_s4 + $0x30] sm:$0xff]  ;;  %636 = vmatprep.mubr.msk.f32.mxu0 %vm832_vm0, %v829_v1  ;;  %s519_s20 = sshll.u32 %s834_s19, 4  ;;  %s520_s20 = int_to_ptr.vmem [resolvable:$true] %s519_s20 }
  0x21   :  { %607 = vmatpush3.msra.mxu0 %v120_v5  ;;  %v111_v15 = vld [vmem:[%s1130_s4 + $0x28] sm:$0xff]  ;;  %v110_v16 = vld [vmem:[%s1130_s4 + $0x20] sm:$0xff]  ;;  %v109_v17 = vld [vmem:[%s1130_s4 + $0x18] sm:$0xff]  ;;  %671 = vmatprep.mubr.msk.f32.mxu1 %vm832_vm0, %v829_v1  ;;  %s798_s2 = scalar_lea.vmem %s520_s20, 128  ;;  %p803_p11 = scmp.lt.s32.totalorder %s520_s20, %s520_s20 }
  0x22   :  { %89 = vrot.lane.b32.xlu0 %v87_v6, %s831_s18  ;;  %608 = vmatprep.subr.mxu0 %v829_v1  ;;  %v108_v18 = vld [vmem:[%s1130_s4 + $0x10] sm:$0xff]  ;;  %v107_v19 = vld [vmem:[%s1130_s4 + $0x8] sm:$0xff]  ;;  %v106_v20 = vld [vmem:[%s1130_s4] sm:$0xff]  ;;  %s833_s4 = smov 96   ;;  %p799_p10 = scmp.ne.s32.totalorder %s520_s20, %s798_s2 }
  0x23   :  { %609 = vmatpush3.msra.mxu0 %v119_v7  ;;  %v215_v21 = vld [vmem:[#allocation2 + $0x78] sm:$0xff]  ;;  %v214_v22 = vld [vmem:[#allocation2 + $0x70] sm:$0xff]  ;;  %v213_v24 = vld [vmem:[#allocation2 + $0x68] sm:$0xff]  ;;  %p804_p12 = scmp.lt.s32.totalorder %s798_s2, %s798_s2 }
  0x24   :  { %610 = vmatprep.subr.mxu0 %v829_v1  ;;  %640 = vmatpush3.msra.mxu1 %v215_v21  ;;  %v212_v25 = vld [vmem:[#allocation2 + $0x60] sm:$0xff]  ;;  %v211_v27 = vld [vmem:[#allocation2 + $0x58] sm:$0xff]  ;;  %v210_v28 = vld [vmem:[#allocation2 + $0x50] sm:$0xff] }
  0x25   :  { %611 = vmatpush3.msra.mxu0 %v118_v8  ;;  %641 = vmatprep.subr.mxu1 %v829_v1  ;;  %v209_v30 = vld [vmem:[#allocation2 + $0x48] sm:$0xff]  ;;  %v208_v32 = vld [vmem:[#allocation2 + $0x40] sm:$0xff]  ;;  %v207_v33 = vld [vmem:[#allocation2 + $0x38] sm:$0xff]  ;;  %p805_p13 = por %p804_p12, %p803_p11 }
  0x26   :  { %612 = vmatprep.subr.mxu0 %v829_v1  ;;  %642 = vmatpush3.msra.mxu1 %v214_v22  ;;  %v206_v34 = vld [vmem:[#allocation2 + $0x30] sm:$0xff]  ;;  %v205_v35 = vld [vmem:[#allocation2 + $0x28] sm:$0xff]  ;;  %v204_v36 = vld [vmem:[#allocation2 + $0x20] sm:$0xff] }
  0x27   :  { %613 = vmatpush3.msra.mxu0 %v117_v9  ;;  %643 = vmatprep.subr.mxu1 %v829_v1  ;;  %v203_v37 = vld [vmem:[#allocation2 + $0x18] sm:$0xff]  ;;  %v86_v38 = vld [vmem:[%s1127_s1] sm:$0xff]  ;;  %v202_v45 = vld [vmem:[#allocation2 + $0x10] sm:$0xff]  ;;  %p806_p0 = pnand %p805_p13, %p799_p10 }
  0x28   :  { %614 = vmatprep.subr.mxu0 %v829_v1  ;;  %644 = vmatpush3.msra.mxu1 %v213_v24  ;;  %v201_v46 = vld [vmem:[#allocation2 + $0x8] sm:$0xff]  ;;  %v200_v47 = vld [vmem:[#allocation2] sm:$0xff]  ;;  %v309_v48 = vld [vmem:[#allocation5 + $0x78] sm:$0xff] }
  0x29   :  { %615 = vmatpush3.msra.mxu0 %v116_v10  ;;  %645 = vmatprep.subr.mxu1 %v829_v1  ;;  %v308_v49 = vld [vmem:[#allocation5 + $0x70] sm:$0xff]  ;;  %v307_v50 = vld [vmem:[#allocation5 + $0x68] sm:$0xff]  ;;  %v306_v51 = vld [vmem:[#allocation5 + $0x60] sm:$0xff] }
  0x2a   :  { %616 = vmatprep.subr.mxu0 %v829_v1  ;;  %646 = vmatpush3.msra.mxu1 %v212_v25  ;;  %v305_v52 = vld [vmem:[#allocation5 + $0x58] sm:$0xff]  ;;  %v304_v53 = vld [vmem:[#allocation5 + $0x50] sm:$0xff]  ;;  %v303_v54 = vld [vmem:[#allocation5 + $0x48] sm:$0xff] }
  0x2b   :  { %617 = vmatpush3.msra.mxu0 %v115_v11  ;;  %647 = vmatprep.subr.mxu1 %v829_v1  ;;  %v302_v55 = vld [vmem:[#allocation5 + $0x40] sm:$0xff]  ;;  %v301_v56 = vld [vmem:[#allocation5 + $0x38] sm:$0xff]  ;;  %v300_v57 = vld [vmem:[#allocation5 + $0x30] sm:$0xff] }
  0x2c   :  { %618 = vmatprep.subr.mxu0 %v829_v1  ;;  %648 = vmatpush3.msra.mxu1 %v211_v27  ;;  %v299_v58 = vld [vmem:[#allocation5 + $0x28] sm:$0xff]  ;;  %v298_v59 = vld [vmem:[#allocation5 + $0x20] sm:$0xff]  ;;  %v297_v60 = vld [vmem:[#allocation5 + $0x18] sm:$0xff] }
  0x2d   :  { %619 = vmatpush3.msra.mxu0 %v114_v12  ;;  %649 = vmatprep.subr.mxu1 %v829_v1  ;;  %v530_v61 = vld [vmem:[%s1131_s5] ss:$0 sm:$0xff]  ;;  %v296_v4 = vld [vmem:[#allocation5 + $0x10] sm:$0xff]  ;;  %v295_v5 = vld [vmem:[#allocation5 + $0x8] sm:$0xff] }
  0x2e   :  { %620 = vmatprep.subr.mxu0 %v829_v1  ;;  %650 = vmatpush3.msra.mxu1 %v210_v28  ;;  %v294_v6 = vld [vmem:[#allocation5] sm:$0xff]  ;;  %v403_v7 = vld [vmem:[%s1136_s10 + $0x78] sm:$0xff]  ;;  %v402_v8 = vld [vmem:[%s1136_s10 + $0x70] sm:$0xff] }
  0x2f   :  { %621 = vmatpush3.msra.mxu0 %v113_v13  ;;  %651 = vmatprep.subr.mxu1 %v829_v1  ;;  %v401_v9 = vld [vmem:[%s1136_s10 + $0x68] sm:$0xff]  ;;  %v400_v10 = vld [vmem:[%s1136_s10 + $0x60] sm:$0xff]  ;;  %v399_v11 = vld [vmem:[%s1136_s10 + $0x58] sm:$0xff] }
  0x30   :  { %622 = vmatprep.subr.mxu0 %v829_v1  ;;  %652 = vmatpush3.msra.mxu1 %v209_v30  ;;  %v398_v12 = vld [vmem:[%s1136_s10 + $0x50] sm:$0xff]  ;;  %v397_v13 = vld [vmem:[%s1136_s10 + $0x48] sm:$0xff]  ;;  %v388_v27 = vld [vmem:[%s1136_s10] sm:$0xff] }
  0x31   :  { %623 = vmatpush3.msra.mxu0 %v112_v14  ;;  %653 = vmatprep.subr.mxu1 %v829_v1  ;;  %v396_v14 = vld [vmem:[%s1136_s10 + $0x40] sm:$0xff]  ;;  %v390_v25 = vld [vmem:[%s1136_s10 + $0x10] sm:$0xff] }
  0x32   :  { %624 = vmatprep.subr.mxu0 %v829_v1  ;;  %654 = vmatpush3.msra.mxu1 %v208_v32  ;;  %v532_v28 = vld [vmem:[%s1135_s9] ss:$0 sm:$0xff] }
  0x33   :  { %625 = vmatpush3.msra.mxu0 %v111_v15  ;;  %655 = vmatprep.subr.mxu1 %v829_v1  ;;  %v395_v15 = vld [vmem:[%s1136_s10 + $0x38] sm:$0xff] }
  0x34   :  { %626 = vmatprep.subr.mxu0 %v829_v1  ;;  %656 = vmatpush3.msra.mxu1 %v207_v33  ;;  %v533_v33 = vld [vmem:[%s1137_s11] ss:$0 sm:$0xff] }
  0x35   :  { %627 = vmatpush3.msra.mxu0 %v110_v16  ;;  %657 = vmatprep.subr.mxu1 %v829_v1  ;;  %v394_v16 = vld [vmem:[%s1136_s10 + $0x30] sm:$0xff] }
  0x36   :  { %628 = vmatprep.subr.mxu0 %v829_v1  ;;  %658 = vmatpush3.msra.mxu1 %v206_v34 }
  0x37   :  { %629 = vmatpush3.msra.mxu0 %v109_v17  ;;  %659 = vmatprep.subr.mxu1 %v829_v1  ;;  %v393_v17 = vld [vmem:[%s1136_s10 + $0x28] sm:$0xff] }
  0x38   :  { %630 = vmatprep.subr.mxu0 %v829_v1  ;;  %660 = vmatpush3.msra.mxu1 %v205_v35 }
  0x39   :  { %631 = vmatpush3.msra.mxu0 %v108_v18  ;;  %661 = vmatprep.subr.mxu1 %v829_v1  ;;  %v392_v18 = vld [vmem:[%s1136_s10 + $0x20] sm:$0xff] }
  0x3a   :  { %632 = vmatprep.subr.mxu0 %v829_v1  ;;  %662 = vmatpush3.msra.mxu1 %v204_v36 }
  0x3b   :  { %633 = vmatpush3.msra.mxu0 %v107_v19  ;;  %663 = vmatprep.subr.mxu1 %v829_v1  ;;  %v391_v19 = vld [vmem:[%s1136_s10 + $0x18] sm:$0xff] }
  0x3c   :  { %634 = vmatprep.subr.mxu0 %v829_v1  ;;  %664 = vmatpush3.msra.mxu1 %v203_v37 }
  0x3d   :  { %635 = vmatpush3.msra.mxu0 %v106_v20  ;;  %665 = vmatprep.subr.mxu1 %v829_v1  ;;  %v531_v20 = vld [vmem:[%s1133_s7] ss:$0 sm:$0xff] }
  0x3e   :  { %674 = vmatprep.subr.mxu0 %v829_v1  ;;  %666 = vmatpush3.msra.mxu1 %v202_v45 }
  0x3f   :  { %667 = vmatprep.subr.mxu1 %v829_v1 }
  0x40   :  { %668 = vmatpush3.msra.mxu1 %v201_v46  ;;  %v534_v46 = vld [vmem:[%s1138_s12] ss:$0 sm:$0xff] }
  0x41   :  { %669 = vmatprep.subr.mxu1 %v829_v1 }
  0x42   :  { %670 = vmatpush3.msra.mxu1 %v200_v47 }
  0x43   :  { %709 = vmatprep.subr.mxu1 %v829_v1 }
  0x91   :  { %v94_v40 = vpop.permute.xlu1 %93 }
  0x99   :  { %v82_v29 = vpop.permute.xlu0 %81 }
  0x9a   :  { %vm83_vm1 = vcmp.eq.s32.totalorder %v78_v26, %v82_v29  ;;  %v389_v26 = vld [vmem:[%s1136_s10 + $0x8] sm:$0xff] }
  0x9b   :  { %v529_v31 = vsel %vm83_vm1, 1.0, %v829_v1 }
  0x9c   :  { %97 = vrot.lane.b32.xlu1 %v529_v31, %s833_s4 }
  0x9d   :  { %v90_v39 = vpop.permute.xlu0 %89 }
  0x9e   :  { %v101_v41 = vsel %vm100_vm2, %v86_v38, %v90_v39 }
  0x9f   :  { %v103_v42 = vsel %vm102_vm3, %v101_v41, %v94_v40 }
 0x10e   :  { %v98_v43 = vpop.permute.xlu1 %97 }
 0x10f   :  { %v105_v44 = vsel %vm104_vm4, %v103_v42, %v98_v43 }
 0x110   :  { %637 = vmatmul.mubr.f32.vlgmr.msra.gmra.mxu0 %v105_v44 }
 0x111   :  { %706 = vmatprep.mubr.msk.f32.mxu0 %vm832_vm0, %v829_v1  ;;  %675 = vmatpush3.msra.mxu0 %v309_v48  ;;  %v535_v48 = vld [vmem:[%s1139_s13] ss:$0 sm:$0xff] }
 0x112   :  { %676 = vmatprep.subr.mxu0 %v829_v1 }
 0x113   :  { %677 = vmatpush3.msra.mxu0 %v308_v49 }
 0x114   :  { %678 = vmatprep.subr.mxu0 %v829_v1 }
 0x115   :  { %679 = vmatpush3.msra.mxu0 %v307_v50 }
 0x116   :  { %680 = vmatprep.subr.mxu0 %v829_v1 }
 0x117   :  { %681 = vmatpush3.msra.mxu0 %v306_v51 }
 0x118   :  { %682 = vmatprep.subr.mxu0 %v829_v1 }
 0x119   :  { %683 = vmatpush3.msra.mxu0 %v305_v52 }
 0x11a   :  { %684 = vmatprep.subr.mxu0 %v829_v1 }
 0x11b   :  { %685 = vmatpush3.msra.mxu0 %v304_v53 }
 0x11c   :  { %686 = vmatprep.subr.mxu0 %v829_v1 }
 0x11d   :  { %687 = vmatpush3.msra.mxu0 %v303_v54 }
 0x11e   :  { %688 = vmatprep.subr.mxu0 %v829_v1 }
 0x11f   :  { %689 = vmatpush3.msra.mxu0 %v302_v55 }
 0x120   :  { %690 = vmatprep.subr.mxu0 %v829_v1 }
 0x121   :  { %691 = vmatpush3.msra.mxu0 %v301_v56 }
 0x122   :  { %692 = vmatprep.subr.mxu0 %v829_v1 }
 0x123   :  { %693 = vmatpush3.msra.mxu0 %v300_v57 }
 0x124   :  { %694 = vmatprep.subr.mxu0 %v829_v1 }
 0x125   :  { %695 = vmatpush3.msra.mxu0 %v299_v58 }
 0x126   :  { %696 = vmatprep.subr.mxu0 %v829_v1 }
 0x127   :  { %697 = vmatpush3.msra.mxu0 %v298_v59 }
 0x128   :  { %698 = vmatprep.subr.mxu0 %v829_v1 }
 0x129   :  { %699 = vmatpush3.msra.mxu0 %v297_v60 }
 0x12a   :  { %700 = vmatprep.subr.mxu0 %v829_v1 }
 0x12b   :  { %701 = vmatpush3.msra.mxu0 %v296_v4 }
 0x12c   :  { %702 = vmatprep.subr.mxu0 %v829_v1 }
 0x12d   :  { %703 = vmatpush3.msra.mxu0 %v295_v5 }
 0x12e   :  { %704 = vmatprep.subr.mxu0 %v829_v1 }
 0x12f   :  { %705 = vmatpush3.msra.mxu0 %v294_v6 }
 0x1d0   :  { %v195_v62 = vpop.f32.mrf.mxu0 }
 0x1d1   :  { %v196_v63 = vadd.f32 %v530_v61, %v195_v62 }
 0x1d2   :  { %v638_v0 = vpop.f32.mrf.mxu0 }
 0x1d3   :  { %v199_v2 = vmax.f32 %v196_v63, 0.0 }
 0x1d5   :  { %672 = vmatmul.mubr.f32.vlgmr.msra.gmra.mxu1 %v199_v2 }
 0x1d6   :  { %741 = vmatprep.mubr.msk.f32.mxu1 %vm832_vm0, %v829_v1  ;;  %710 = vmatpush3.msra.mxu1 %v403_v7 }
 0x1d7   :  { %711 = vmatprep.subr.mxu1 %v829_v1 }
 0x1d8   :  { %712 = vmatpush3.msra.mxu1 %v402_v8 }
 0x1d9   :  { %713 = vmatprep.subr.mxu1 %v829_v1 }
 0x1da   :  { %714 = vmatpush3.msra.mxu1 %v401_v9 }
 0x1db   :  { %715 = vmatprep.subr.mxu1 %v829_v1 }
 0x1dc   :  { %716 = vmatpush3.msra.mxu1 %v400_v10 }
 0x1dd   :  { %717 = vmatprep.subr.mxu1 %v829_v1 }
 0x1de   :  { %718 = vmatpush3.msra.mxu1 %v399_v11 }
 0x1df   :  { %719 = vmatprep.subr.mxu1 %v829_v1 }
 0x1e0   :  { %720 = vmatpush3.msra.mxu1 %v398_v12 }
 0x1e1   :  { %721 = vmatprep.subr.mxu1 %v829_v1 }
 0x1e2   :  { %722 = vmatpush3.msra.mxu1 %v397_v13 }
 0x1e3   :  { %723 = vmatprep.subr.mxu1 %v829_v1 }
 0x1e4   :  { %724 = vmatpush3.msra.mxu1 %v396_v14 }
 0x1e5   :  { %725 = vmatprep.subr.mxu1 %v829_v1 }
 0x1e6   :  { %726 = vmatpush3.msra.mxu1 %v395_v15 }
 0x1e7   :  { %727 = vmatprep.subr.mxu1 %v829_v1 }
 0x1e8   :  { %728 = vmatpush3.msra.mxu1 %v394_v16 }
 0x1e9   :  { %729 = vmatprep.subr.mxu1 %v829_v1 }
 0x1ea   :  { %730 = vmatpush3.msra.mxu1 %v393_v17 }
 0x1eb   :  { %731 = vmatprep.subr.mxu1 %v829_v1 }
 0x1ec   :  { %732 = vmatpush3.msra.mxu1 %v392_v18 }
 0x1ed   :  { %733 = vmatprep.subr.mxu1 %v829_v1 }
 0x1ee   :  { %734 = vmatpush3.msra.mxu1 %v391_v19 }
 0x1ef   :  { %735 = vmatprep.subr.mxu1 %v829_v1 }
 0x1f0   :  { %736 = vmatpush3.msra.mxu1 %v390_v25 }
 0x1f1   :  { %737 = vmatprep.subr.mxu1 %v829_v1 }
 0x1f2   :  { %738 = vmatpush3.msra.mxu1 %v389_v26 }
 0x1f3   :  { %739 = vmatprep.subr.mxu1 %v829_v1 }
 0x1f4   :  { %740 = vmatpush3.msra.mxu1 %v388_v27 }
 0x295   :  { %v289_v21 = vpop.f32.mrf.mxu1 }
 0x296   :  { %v290_v22 = vadd.f32 %v531_v20, %v289_v21 }
 0x297   :  { %v673_v23 = vpop.f32.mrf.mxu1 }
 0x298   :  { %v293_v24 = vmax.f32 %v290_v22, 0.0 }
 0x29a   :  { %707 = vmatmul.mubr.f32.vlgmr.msra.gmra.mxu0 %v293_v24 }
 0x35a   :  { %v383_v29 = vpop.f32.mrf.mxu0 }
 0x35b   :  { %v384_v30 = vadd.f32 %v532_v28, %v383_v29 }
 0x35c   :  { %v708_v31 = vpop.f32.mrf.mxu0 }
 0x35d   :  { %v387_v32 = vmax.f32 %v384_v30, 0.0 }
 0x35f   :  { %742 = vmatmul.mubr.f32.vlgmr.msra.gmra.mxu1 %v387_v32 }
 0x41f   :  { %v477_v34 = vpop.f32.mrf.mxu1 }
 0x420   :  { %v478_v1 = vadd.f32 %v533_v33, %v477_v34 }
 0x421   :  { %v743_v35 = vpop.f32.mrf.mxu1 }
 0x422   :  { %v481_v36 = vsel %vm100_vm2, %v478_v1, 0.0 }
 0x423   :  { %482 = vadd.xlane.f32.xlu0 %v481_v36 }
 0x4ac   :  { %v483_v37 = vpop.xlane.xlu0 %482 }
 0x4ad   :  { %v485_v38 = vmul.f32 0.03125, %v483_v37 }
 0x4af   :  { %v486_v39 = vsub.f32 %v478_v1, %v485_v38 }
 0x4b1   :  { %v487_v40 = vmul.f32 %v486_v39, %v486_v39 }
 0x4b3   :  { %v488_v41 = vsel %vm100_vm2, %v487_v40, 0.0 }
 0x4b4   :  { %489 = vadd.xlane.f32.xlu1 %v488_v41 }
 0x53d   :  { %v490_v42 = vpop.xlane.xlu1 %489 }
 0x53e   :  { %v491_v43 = vmul.f32 0.03125, %v490_v42 }
 0x540   :  { %v492_v44 = vadd.f32 1e-05, %v491_v43 }
 0x542   :  { %756 = vrsqrt.f32 %v492_v44 }
 0x54f   :  { %v757_v45 = vpop.eup %756 }
 0x550   :  { %v494_v47 = vmul.f32 %v757_v45, %v486_v39 }
 0x552   :  { %v502_v49 = vmul.f32 %v534_v46, %v494_v47 }
 0x554   :  { %v510_v50 = vadd.f32 %v535_v48, %v502_v49 }
 0x556   :  { %v511_v51 = vadd.f32 %v510_v50, %v924_v3 }
 0x558   :  { %512 = vst.msk [vmem:[#allocation7] sm:$0xff] %vm100_vm2, %v511_v51 }
 0x559   :  { %809 = shalt.err (!%p806_p0)
}
 0x55a   :  { %522 = dma.vmem_to_hbm [thread:$0]  %s520_s20, 128, %s1140_s14, [#allocation4]  }
 0x55b   :  { %822 = dma.done.wait [#allocation4], 128  }
 0x55c   :  { %823 = vsyncadd [#allocation4], 4294967168 }
 0x55d   :  { %526 = vsyncpa [#allocation3], 1 }
 0x55e   :  { %527 = vsyncpa [#allocation6], 1 }
 0x55f   :  { %528 = vsyncpa [#allocation4], 1 }

</bundles_post_ra>
